<compile_context>
chip_gen: v7x
topology: tpu7x:2x2x1
jax: 0.10.0
libtpu: 0.0.40
codegen_flags: <defaults>
</compile_context>

<pallas_src>
import functools

import jax
import jax.numpy as jnp
from jax.experimental import pallas as pl
from jax.experimental.pallas import tpu as pltpu


def _balanced_softmax_kernel(logits_ref, labels_ref, log_spc_ref, out_ref, *, n_total):
    """One batch tile: per-sample balanced-softmax cross-entropy.

    logits_ref:  (TM, C) VMEM (input dtype, cast to f32 in-register)
    labels_ref:  (TM, 1) int32 VMEM
    log_spc_ref: (1, C)  float32 VMEM (log class counts, precomputed)
    out_ref:     (TM, 1) float32 VMEM (per-sample loss; padded rows -> 0)
    """
    i = pl.program_id(0)
    tm, c = logits_ref.shape

    # Balanced-softmax adjustment + numerically stable shift.
    adj = logits_ref[...].astype(jnp.float32) + log_spc_ref[...]          # (TM, C)
    m = jnp.max(adj, axis=-1, keepdims=True)                              # (TM, 1)
    shifted = adj - m                                                     # (TM, C)

    # Gather shifted[r, labels[r]] via one-hot mask (no dynamic gather on TPU).
    class_ids = jax.lax.broadcasted_iota(jnp.int32, (tm, c), 1)           # (TM, C)
    onehot = class_ids == labels_ref[...]                                 # (TM, C)
    picked = jnp.sum(jnp.where(onehot, shifted, 0.0), axis=-1, keepdims=True)

    # log-sum-exp of the shifted row; per-sample CE = lse - picked.
    lse = jnp.log(jnp.sum(jnp.exp(shifted), axis=-1, keepdims=True))      # (TM, 1)
    per_sample = lse - picked                                             # (TM, 1)

    # Zero out rows beyond the true batch size (padding of the last tile).
    row_ids = i * tm + jax.lax.broadcasted_iota(jnp.int32, (tm, 1), 0)
    out_ref[...] = jnp.where(row_ids < n_total, per_sample, 0.0)


def _round_up(x, m):
    return (x + m - 1) // m * m


def balanced_softmax_loss(logits, labels, samples_per_class):
    """logits: (N, C) float, labels: (N,) int, samples_per_class: (C,) float."""
    n, c = logits.shape
    labels2d = labels.astype(jnp.int32).reshape(n, 1)
    # Hoist the class-count log out of the kernel (tiny, done once).
    log_spc = jnp.log(samples_per_class.astype(jnp.float32)).reshape(1, c)

    # Pick the largest batch tile whose double-buffered logits stream fits a
    # ~24 MiB budget (safe under the 48 MiB scoped-VMEM limit requested below
    # on v5e/v6e/v7x alike).  Keep TM a multiple of 8 (sublane granularity).
    bytes_per_row = c * jnp.dtype(logits.dtype).itemsize
    stream_budget = 24 * 1024 * 1024
    tm = (stream_budget // (2 * bytes_per_row)) // 8 * 8
    tm = max(8, min(1024, tm))
    tm = min(tm, _round_up(n, 8))
    grid = (pl.cdiv(n, tm),)

    kernel = functools.partial(_balanced_softmax_kernel, n_total=n)

    per_sample = pl.pallas_call(
        kernel,
        out_shape=jax.ShapeDtypeStruct((n, 1), jnp.float32),
        grid=grid,
        in_specs=[
            pl.BlockSpec((tm, c), lambda i: (i, 0)),   # logits tile
            pl.BlockSpec((tm, 1), lambda i: (i, 0)),   # labels tile
            pl.BlockSpec((1, c), lambda i: (0, 0)),    # log counts (resident)
        ],
        out_specs=pl.BlockSpec((tm, 1), lambda i: (i, 0)),
        compiler_params=pltpu.CompilerParams(
            dimension_semantics=("parallel",),          # megacore-shardable batch axis
            vmem_limit_bytes=48 * 1024 * 1024,
        ),
    )(logits, labels2d, log_spc)

    # Mean over the TRUE global batch size (padded rows contribute 0).
    return jnp.sum(per_sample) / jnp.float32(n)


def _reference(logits, labels, samples_per_class):
    adj = logits.astype(jnp.float32) + jnp.log(samples_per_class.astype(jnp.float32))[None, :]
    logp = jax.nn.log_softmax(adj, axis=-1)
    return -jnp.mean(jnp.take_along_axis(logp, labels[:, None], axis=-1))


if __name__ == "__main__":
    key = jax.random.PRNGKey(0)
    k1, k2 = jax.random.split(key)

    N, C = 8, 32  # small shapes: batch=8, num_classes=32
    logits = jax.random.normal(k1, (N, C), dtype=jnp.float32)
    labels = jax.random.randint(k2, (N,), 0, C, dtype=jnp.int32)

    # Deterministic synthetic class-frequency distribution (replaces pickle load).
    samples_per_class = jnp.arange(1, C + 1, dtype=jnp.float32) * 10.0

    loss = balanced_softmax_loss(logits, labels, samples_per_class)
    jax.block_until_ready(loss)

    ref = _reference(logits, labels, samples_per_class)
    assert jnp.allclose(loss, ref, atol=1e-5, rtol=1e-5), (loss, ref)

    print("KERNEL_OK")
</pallas_src>

<mosaic_0001>
module attributes {stable_mosaic.version = 11 : i64} {
  func.func @_balanced_softmax_kernel(%arg0: i32, %arg1: memref<8x32xf32, #tpu.memory_space<vmem>>, %arg2: memref<8x1xi32, #tpu.memory_space<vmem>>, %arg3: memref<1x32xf32, #tpu.memory_space<vmem>>, %arg4: memref<8x1xf32, #tpu.memory_space<vmem>>) attributes {dimension_semantics = [#tpu.dimension_semantics<parallel>], iteration_bounds = array<i64: 1>, scalar_prefetch = 0 : i64, scratch_operands = 0 : i64, tpu.core_type = #tpu.core_type<tc>, window_params = [{transform_indices = @transform_0, window_bounds = array<i64: 8, 32>}, {transform_indices = @transform_1, window_bounds = array<i64: 8, 1>}, {pipeline_mode = #tpu.pipeline_mode<synchronous>, transform_indices = @transform_2, window_bounds = array<i64: 1, 32>}, {transform_indices = @transform_3, window_bounds = array<i64: 8, 1>}]} {
    %c0 = arith.constant 0 : index
    %c0_0 = arith.constant 0 : index
    %0 = vector.load %arg1[%c0, %c0_0] : memref<8x32xf32, #tpu.memory_space<vmem>>, vector<8x32xf32>
    %c0_1 = arith.constant 0 : index
    %c0_2 = arith.constant 0 : index
    %1 = vector.load %arg3[%c0_1, %c0_2] : memref<1x32xf32, #tpu.memory_space<vmem>>, vector<1x32xf32>
    %2 = vector.broadcast %1 : vector<1x32xf32> to vector<8x32xf32>
    %3 = arith.addf %0, %2 : vector<8x32xf32>
    %cst = arith.constant dense<0xFF800000> : vector<8xf32>
    %4 = vector.multi_reduction <maximumf>, %3, %cst [1] : vector<8x32xf32> to vector<8xf32>
    %5 = vector.shape_cast %4 : vector<8xf32> to vector<8x1xf32>
    %6 = vector.broadcast %5 : vector<8x1xf32> to vector<8x32xf32>
    %7 = arith.subf %3, %6 : vector<8x32xf32>
    %8 = tpu.iota {dimensions = array<i32: 1>} : vector<8x32xi32>
    %c0_3 = arith.constant 0 : index
    %c0_4 = arith.constant 0 : index
    %9 = vector.load %arg2[%c0_3, %c0_4] : memref<8x1xi32, #tpu.memory_space<vmem>>, vector<8x1xi32>
    %10 = vector.broadcast %9 : vector<8x1xi32> to vector<8x32xi32>
    %11 = arith.cmpi eq, %8, %10 : vector<8x32xi32>
    %cst_5 = arith.constant 0.000000e+00 : f32
    %12 = vector.broadcast %cst_5 : f32 to vector<8x32xf32>
    %13 = arith.select %11, %7, %12 : vector<8x32xi1>, vector<8x32xf32>
    %cst_6 = arith.constant dense<0.000000e+00> : vector<8xf32>
    %14 = vector.multi_reduction <add>, %13, %cst_6 [1] : vector<8x32xf32> to vector<8xf32>
    %15 = vector.shape_cast %14 : vector<8xf32> to vector<8x1xf32>
    %16 = math.exp %7 : vector<8x32xf32>
    %cst_7 = arith.constant dense<0.000000e+00> : vector<8xf32>
    %17 = vector.multi_reduction <add>, %16, %cst_7 [1] : vector<8x32xf32> to vector<8xf32>
    %18 = vector.shape_cast %17 : vector<8xf32> to vector<8x1xf32>
    %19 = math.log %18 : vector<8x1xf32>
    %20 = arith.subf %19, %15 : vector<8x1xf32>
    %c8_i32 = arith.constant 8 : i32
    %21 = arith.muli %arg0, %c8_i32 : i32
    %22 = tpu.iota {dimensions = array<i32: 0>} : vector<8x1xi32>
    %23 = vector.broadcast %21 : i32 to vector<8x1xi32>
    %24 = arith.addi %23, %22 : vector<8x1xi32>
    %c8_i32_8 = arith.constant 8 : i32
    %25 = vector.broadcast %c8_i32_8 : i32 to vector<8x1xi32>
    %26 = arith.cmpi slt, %24, %25 : vector<8x1xi32>
    %cst_9 = arith.constant 0.000000e+00 : f32
    %27 = vector.broadcast %cst_9 : f32 to vector<8x1xf32>
    %28 = arith.select %26, %20, %27 : vector<8x1xi1>, vector<8x1xf32>
    %c0_10 = arith.constant 0 : index
    %c0_11 = arith.constant 0 : index
    %29 = vector.load %arg4[%c0_10, %c0_11] : memref<8x1xf32, #tpu.memory_space<vmem>>, vector<8x1xf32>
    tpu.vector_store %arg4[%c0_10, %c0_11], %28 {strides = array<i32>} : memref<8x1xf32, #tpu.memory_space<vmem>>, vector<8x1xf32>,
    return
  }
  func.func @transform_0(%arg0: i32) -> (i32, i32) {
    %c0_i32 = arith.constant 0 : i32
    %c0_i32_0 = arith.constant 0 : i32
    return %arg0, %c0_i32 : i32, i32
  }
  func.func @transform_1(%arg0: i32) -> (i32, i32) {
    %c0_i32 = arith.constant 0 : i32
    %c0_i32_0 = arith.constant 0 : i32
    return %arg0, %c0_i32 : i32, i32
  }
  func.func @transform_2(%arg0: i32) -> (i32, i32) {
    %c0_i32 = arith.constant 0 : i32
    %c0_i32_0 = arith.constant 0 : i32
    %c0_i32_1 = arith.constant 0 : i32
    return %c0_i32, %c0_i32_0 : i32, i32
  }
  func.func @transform_3(%arg0: i32) -> (i32, i32) {
    %c0_i32 = arith.constant 0 : i32
    %c0_i32_0 = arith.constant 0 : i32
    return %arg0, %c0_i32 : i32, i32
  }
}

</mosaic_0001>

<bundles_post_ra>
// kernel: tpu_custom_call.1
= control target key start
LH: loop header
LB: loop body
LE: loop exit
PB: predicated region body
PF: predicated region fallthrough
CT: control target
= control target key end

     0   :  { %vm23_vm0 = vcmask 261120   ;;  %v67_v2 = vmov 0   ;;  %v28_v9 = vlaneseq  ;;  %vm54_vm2 = vcmask 7168   ;;  %s103_s0 = inlined_call_operand.vmem [shape: f32[8,32], index: 0, kind: input, shape index: {}]   ;;  %s104_s2 = inlined_call_operand.vmem [shape: f32[1,32], index: 2, kind: input, shape index: {}]   ;;  %s105_s1 = inlined_call_operand.vmem [shape: s32[8,1], index: 1, kind: input, shape index: {}]   ;;  %s106_s3 = inlined_call_operand.vmem [shape: f32[8,1], index: 3, kind: output, shape index: {}]  }
   0x1   :  { %v14_v0 = vld [vmem:[%s103_s0] sm:$0xff]  ;;  %62 = vset.pattern.permute.xlu0 %v67_v2 }
   0x2   :  { %v60_v1 = vld [vmem:[%s104_s2] ss:$0 sm:$0xff]  ;;  %v29_v10 = vand.u32 127, %v28_v9 }
   0x3   :  { %v22_v3 = vadd.f32 %v60_v1, %v14_v0  ;;  %v30_v5 = vld [vmem:[%s105_s1] sm:$0xff] }
   0x5   :  { %v24_v4 = vsel %vm23_vm0, %v22_v3, -inf }
   0x6   :  { %25 = vmax.xlane.f32.xlu0 %v24_v4 }
  0x1c   :  { %32 = vperm.xlu0 %62, %v30_v5  }
  0x93   :  { %v26_v6 = vpop.xlane.xlu0 %25 }
  0x94   :  { %v27_v7 = vsub.f32 %v22_v3, %v26_v6 }
  0x96   :  { %v39_v8 = vmul.f32 1.442695, %v27_v7 }
  0x98   :  { %63 = vpow2.f32 %v39_v8 }
  0x9b   :  { %v33_v11 = vpop.permute.xlu0 %32 }
  0x9c   :  { %vm34_vm1 = vcmp.eq.s32.totalorder %v29_v10, %v33_v11 }
  0x9d   :  { %v35_v14 = vsel %vm34_vm1, %v27_v7, 0.0 }
  0x9e   :  { %v36_v15 = vsel %vm23_vm0, %v35_v14, 0.0 }
  0xa2   :  { %v64_v12 = vpop.eup %63 }
  0xa3   :  { %v41_v13 = vsel %vm23_vm0, %v64_v12, 0.0 }
  0xa4   :  { %42 = vadd.xlane.f32.xlu1 %v41_v13 }
  0xa8   :  { %37 = vadd.xlane.f32.xlu1 %v36_v15 }
 0x131   :  { %v43_v16 = vpop.xlane.xlu1 %42 }
 0x132   :  { %65 = vlog2.f32 %v43_v16 }
 0x135   :  { %v38_v19 = vpop.xlane.xlu1 %37 }
 0x13c   :  { %v66_v17 = vpop.eup %65 }
 0x13d   :  { %v45_v18 = vmul.f32 0.6931472, %v66_v17 }
 0x13f   :  { %v46_v20 = vsub.f32 %v45_v18, %v38_v19 }
 0x141   :  { %55 = vst.msk [vmem:[%s106_s3] sm:$0xff] %vm54_vm2, %v46_v20 }

</bundles_post_ra>
